<compile_context>
chip_gen: v5e
topology: v5e:2x2
jax: 0.10.0
libtpu: 0.0.40
codegen_flags: <defaults>
</compile_context>

<pallas_src>
import jax
import jax.numpy as jnp
from jax import lax
from jax.experimental import pallas as pl
from jax.experimental.pallas import tpu as pltpu

EPS = 1e-5  # torch.nn.BatchNorm1d default eps


def _round_up(x: int, m: int) -> int:
    return ((x + m - 1) // m) * m


def _pick_feature_tile(batch: int, din: int, dout: int,
                       budget_bytes: int = 40 * 1024 * 1024) -> int:
    """Largest lane-dense feature tile whose double-buffered footprint fits VMEM."""
    dout_p128 = _round_up(dout, 128)
    for cand in (512, 256, 128):
        tn = min(cand, dout_p128)
        # per-grid-step footprint, x2 for the pipeline's double buffering:
        #   x (bf16, resident) + W tile (bf16) + 3 per-feature f32 vecs + f32 out tile
        need = 2 * (batch * din * 2 + din * tn * 2 + 3 * tn * 4 + batch * tn * 4)
        if need <= budget_bytes:
            return tn
    return 128


def _stackable_layer_kernel(x_ref, w_ref, b_ref, mult_ref, add_ref, o_ref):
    """Per feature-tile: fc (bf16 MXU, f32 acc) -> tanh -> batch-norm -> affine.

    The whole batch is resident (BatchNorm1d with track_running_stats=False
    reduces over the batch dimension); only features are tiled.
    """
    x = x_ref[...]            # (B, Din)   bf16
    w = w_ref[...]            # (Din, TN)  bf16

    # fc + nonlinearity: bf16 MXU matmul with f32 accumulation, f32 epilogue.
    acts = jnp.tanh(jnp.dot(x, w, preferred_element_type=jnp.float32)
                    + b_ref[...])                                   # (B, TN) f32

    # BatchNorm1d(affine=False, track_running_stats=False): biased batch stats.
    # One-pass stats (safe: tanh output is bounded in (-1, 1)).
    n = acts.shape[0]
    inv_n = 1.0 / n
    s1 = jnp.sum(acts, axis=0, keepdims=True)                       # (1, TN)
    s2 = jnp.sum(acts * acts, axis=0, keepdims=True)                # (1, TN)
    mean = s1 * inv_n
    var = jnp.maximum(s2 * inv_n - mean * mean, 0.0)

    # Fold affine_mult into the normalization scale (one (B, TN) sweep saved);
    # rsqrt runs on the EUP slot.
    scale = mult_ref[...] * lax.rsqrt(var + EPS)                    # (1, TN)
    o_ref[...] = (acts - mean) * scale + add_ref[...]


@jax.jit
def stackable_layer_forward(x, w_t, b, affine_mult, affine_add):
    """x: (B, Din) f32; w_t: (Din, Dout); b/mult/add: (1, Dout). Returns (B, Dout) f32."""
    batch, din = x.shape
    dout = w_t.shape[1]

    tn = _pick_feature_tile(batch, din, dout)
    dout_pad = _round_up(dout, tn)
    pad = dout_pad - dout
    if pad:
        # Padded columns produce zeros through the matmul/tanh and are sliced
        # off below; BN is per-feature, so they never touch real columns.
        w_t = jnp.pad(w_t, ((0, 0), (0, pad)))
        b = jnp.pad(b, ((0, 0), (0, pad)))
        affine_mult = jnp.pad(affine_mult, ((0, 0), (0, pad)))
        affine_add = jnp.pad(affine_add, ((0, 0), (0, pad)))

    # bf16 MXU inputs (f32 accumulation happens inside the kernel).
    x_bf = x.astype(jnp.bfloat16)
    w_bf = w_t.astype(jnp.bfloat16)

    num_tiles = dout_pad // tn
    # Double-buffered per-step footprint; used to size the scoped-VMEM limit
    # (kept <= 48 MiB so it also fits v7x's 64 MiB physical VMEM).
    need = 2 * (batch * din * 2 + din * tn * 2 + 3 * tn * 4 + batch * tn * 4)
    vmem_limit = min(max(need + (8 << 20), 32 << 20), 48 << 20)

    # TODO(synk): for very large in_features add an inner "arbitrary" K grid
    # axis with a VMEM accumulator + pl.when init/finalize (not needed here).
    out = pl.pallas_call(
        _stackable_layer_kernel,
        out_shape=jax.ShapeDtypeStruct((batch, dout_pad), jnp.float32),
        grid_spec=pltpu.PrefetchScalarGridSpec(
            num_scalar_prefetch=0,
            grid=(num_tiles,),
            in_specs=[
                pl.BlockSpec((batch, din), lambda j: (0, 0)),   # x (resident)
                pl.BlockSpec((din, tn), lambda j: (0, j)),      # W tile
                pl.BlockSpec((1, tn), lambda j: (0, j)),        # bias tile
                pl.BlockSpec((1, tn), lambda j: (0, j)),        # affine_mult tile
                pl.BlockSpec((1, tn), lambda j: (0, j)),        # affine_add tile
            ],
            out_specs=pl.BlockSpec((batch, tn), lambda j: (0, j)),
        ),
        compiler_params=pltpu.CompilerParams(
            dimension_semantics=("parallel",),   # feature tiles split across TCs
            vmem_limit_bytes=vmem_limit,
        ),
        cost_estimate=pl.CostEstimate(
            flops=2 * batch * din * dout_pad,
            transcendentals=batch * dout_pad,     # tanh + rsqrt
            bytes_accessed=(batch * din * 2 + din * dout_pad * 2
                            + 3 * dout_pad * 4 + batch * dout_pad * 4),
        ),
    )(x_bf, w_bf, b, affine_mult, affine_add)

    if pad:
        out = out[:, :dout]
    return out


def init_params(key, in_features, out_features):
    """Deterministic synthetic parameters (mirrors torch Linear default init bounds
    and AffineLayer.create identity init)."""
    k_w, k_b = jax.random.split(key)
    bound = 1.0 / (in_features ** 0.5)
    # torch stores Linear weight as (out, in); we keep the transposed (in, out) layout.
    w_t = jax.random.uniform(
        k_w, (in_features, out_features), jnp.float32, -bound, bound)
    b = jax.random.uniform(k_b, (1, out_features), jnp.float32, -bound, bound)
    affine_mult = jnp.ones((1, out_features), jnp.float32)   # identity affine
    affine_add = jnp.zeros((1, out_features), jnp.float32)
    return w_t, b, affine_mult, affine_add


def reference_forward(x, w_t, b, affine_mult, affine_add):
    """Pure-JAX reference of the PyTorch module semantics (f32 throughout)."""
    acts = jnp.tanh(
        jnp.dot(x, w_t, precision=lax.Precision.HIGHEST) + b)
    mean = jnp.mean(acts, axis=0, keepdims=True)
    var = jnp.mean((acts - mean) ** 2, axis=0, keepdims=True)
    normed = (acts - mean) / jnp.sqrt(var + EPS)
    return normed * affine_mult + affine_add


if __name__ == "__main__":
    key = jax.random.PRNGKey(0)
    k_x, k_p = jax.random.split(key)

    batch, in_features, out_features = 8, 32, 64
    x = jax.random.normal(k_x, (batch, in_features), jnp.float32)
    w_t, b, affine_mult, affine_add = init_params(k_p, in_features, out_features)

    out = stackable_layer_forward(x, w_t, b, affine_mult, affine_add)
    out = jax.block_until_ready(out)
    assert out.shape == (batch, out_features)

    # Module-semantics (f32) reference: loose tolerance since the kernel feeds
    # the MXU in bf16.
    ref_f32 = reference_forward(x, w_t, b, affine_mult, affine_add)
    assert jnp.allclose(out, ref_f32, atol=3e-2, rtol=3e-2), \
        "mismatch vs f32 reference"

    # Precision-matched reference (inputs rounded to bf16, f32 accumulation).
    ref_bf16 = reference_forward(
        x.astype(jnp.bfloat16).astype(jnp.float32),
        w_t.astype(jnp.bfloat16).astype(jnp.float32),
        b, affine_mult, affine_add)
    assert jnp.allclose(out, ref_bf16, atol=2e-3, rtol=2e-3), \
        "mismatch vs bf16-matched reference"

    print("KERNEL_OK")
</pallas_src>

<mosaic_0001>
module attributes {stable_mosaic.version = 11 : i64} {
  func.func @_stackable_layer_kernel(%arg0: i32, %arg1: memref<8x32xbf16, #tpu.memory_space<vmem>>, %arg2: memref<32x128xbf16, #tpu.memory_space<vmem>>, %arg3: memref<1x128xf32, #tpu.memory_space<vmem>>, %arg4: memref<1x128xf32, #tpu.memory_space<vmem>>, %arg5: memref<1x128xf32, #tpu.memory_space<vmem>>, %arg6: memref<8x128xf32, #tpu.memory_space<vmem>>) attributes {dimension_semantics = [#tpu.dimension_semantics<parallel>], iteration_bounds = array<i64: 1>, scalar_prefetch = 0 : i64, scratch_operands = 0 : i64, tpu.core_type = #tpu.core_type<tc>, window_params = [{pipeline_mode = #tpu.pipeline_mode<synchronous>, transform_indices = @transform_0, window_bounds = array<i64: 8, 32>}, {transform_indices = @transform_1, window_bounds = array<i64: 32, 128>}, {transform_indices = @transform_2, window_bounds = array<i64: 1, 128>}, {transform_indices = @transform_3, window_bounds = array<i64: 1, 128>}, {transform_indices = @transform_4, window_bounds = array<i64: 1, 128>}, {transform_indices = @transform_5, window_bounds = array<i64: 8, 128>}]} {
    %c0 = arith.constant 0 : index
    %c0_0 = arith.constant 0 : index
    %0 = vector.load %arg1[%c0, %c0_0] : memref<8x32xbf16, #tpu.memory_space<vmem>>, vector<8x32xbf16>
    %c0_1 = arith.constant 0 : index
    %c0_2 = arith.constant 0 : index
    %1 = vector.load %arg2[%c0_1, %c0_2] : memref<32x128xbf16, #tpu.memory_space<vmem>>, vector<32x128xbf16>
    %cst = arith.constant dense<0.000000e+00> : vector<8x128xf32>
    %2 = tpu.matmul %0, %1, %cst {dimension_numbers = #tpu.dot_dimension_numbers<[1], [0], [0], [1], [0, 0, 1, 1], [], []>} : vector<8x32xbf16>, vector<32x128xbf16>, vector<8x128xf32> -> vector<8x128xf32>
    %c0_3 = arith.constant 0 : index
    %c0_4 = arith.constant 0 : index
    %3 = vector.load %arg3[%c0_3, %c0_4] : memref<1x128xf32, #tpu.memory_space<vmem>>, vector<1x128xf32>
    %4 = vector.broadcast %3 : vector<1x128xf32> to vector<8x128xf32>
    %5 = arith.addf %2, %4 : vector<8x128xf32>
    %6 = math.tanh %5 : vector<8x128xf32>
    %cst_5 = arith.constant dense<0.000000e+00> : vector<128xf32>
    %7 = vector.multi_reduction <add>, %6, %cst_5 [0] : vector<8x128xf32> to vector<128xf32>
    %8 = vector.shape_cast %7 : vector<128xf32> to vector<1x128xf32>
    %9 = arith.mulf %6, %6 : vector<8x128xf32>
    %cst_6 = arith.constant dense<0.000000e+00> : vector<128xf32>
    %10 = vector.multi_reduction <add>, %9, %cst_6 [0] : vector<8x128xf32> to vector<128xf32>
    %11 = vector.shape_cast %10 : vector<128xf32> to vector<1x128xf32>
    %cst_7 = arith.constant 1.250000e-01 : f32
    %12 = vector.broadcast %cst_7 : f32 to vector<1x128xf32>
    %13 = arith.mulf %8, %12 : vector<1x128xf32>
    %cst_8 = arith.constant 1.250000e-01 : f32
    %14 = vector.broadcast %cst_8 : f32 to vector<1x128xf32>
    %15 = arith.mulf %11, %14 : vector<1x128xf32>
    %16 = arith.mulf %13, %13 : vector<1x128xf32>
    %17 = arith.subf %15, %16 : vector<1x128xf32>
    %cst_9 = arith.constant 0.000000e+00 : f32
    %18 = vector.broadcast %cst_9 : f32 to vector<1x128xf32>
    %19 = arith.maximumf %17, %18 : vector<1x128xf32>
    %c0_10 = arith.constant 0 : index
    %c0_11 = arith.constant 0 : index
    %20 = vector.load %arg4[%c0_10, %c0_11] : memref<1x128xf32, #tpu.memory_space<vmem>>, vector<1x128xf32>
    %cst_12 = arith.constant 9.99999974E-6 : f32
    %21 = vector.broadcast %cst_12 : f32 to vector<1x128xf32>
    %22 = arith.addf %19, %21 : vector<1x128xf32>
    %23 = math.rsqrt %22 : vector<1x128xf32>
    %24 = arith.mulf %20, %23 : vector<1x128xf32>
    %25 = vector.broadcast %13 : vector<1x128xf32> to vector<8x128xf32>
    %26 = arith.subf %6, %25 : vector<8x128xf32>
    %27 = vector.broadcast %24 : vector<1x128xf32> to vector<8x128xf32>
    %28 = arith.mulf %26, %27 : vector<8x128xf32>
    %c0_13 = arith.constant 0 : index
    %c0_14 = arith.constant 0 : index
    %29 = vector.load %arg5[%c0_13, %c0_14] : memref<1x128xf32, #tpu.memory_space<vmem>>, vector<1x128xf32>
    %30 = vector.broadcast %29 : vector<1x128xf32> to vector<8x128xf32>
    %31 = arith.addf %28, %30 : vector<8x128xf32>
    %c0_15 = arith.constant 0 : index
    %c0_16 = arith.constant 0 : index
    %32 = vector.load %arg6[%c0_15, %c0_16] : memref<8x128xf32, #tpu.memory_space<vmem>>, vector<8x128xf32>
    tpu.vector_store %arg6[%c0_15, %c0_16], %31 {strides = array<i32>} : memref<8x128xf32, #tpu.memory_space<vmem>>, vector<8x128xf32>,
    return
  }
  func.func @transform_0(%arg0: i32) -> (i32, i32) {
    %c0_i32 = arith.constant 0 : i32
    %c0_i32_0 = arith.constant 0 : i32
    %c0_i32_1 = arith.constant 0 : i32
    return %c0_i32, %c0_i32_0 : i32, i32
  }
  func.func @transform_1(%arg0: i32) -> (i32, i32) {
    %c0_i32 = arith.constant 0 : i32
    %c0_i32_0 = arith.constant 0 : i32
    return %c0_i32, %arg0 : i32, i32
  }
  func.func @transform_2(%arg0: i32) -> (i32, i32) {
    %c0_i32 = arith.constant 0 : i32
    %c0_i32_0 = arith.constant 0 : i32
    return %c0_i32, %arg0 : i32, i32
  }
  func.func @transform_3(%arg0: i32) -> (i32, i32) {
    %c0_i32 = arith.constant 0 : i32
    %c0_i32_0 = arith.constant 0 : i32
    return %c0_i32, %arg0 : i32, i32
  }
  func.func @transform_4(%arg0: i32) -> (i32, i32) {
    %c0_i32 = arith.constant 0 : i32
    %c0_i32_0 = arith.constant 0 : i32
    return %c0_i32, %arg0 : i32, i32
  }
  func.func @transform_5(%arg0: i32) -> (i32, i32) {
    %c0_i32 = arith.constant 0 : i32
    %c0_i32_0 = arith.constant 0 : i32
    return %c0_i32, %arg0 : i32, i32
  }
}

</mosaic_0001>

<bundles_post_ra>
// kernel: stackable_layer_forward.1
= control target key start
LH: loop header
LB: loop body
LE: loop exit
PB: predicated region body
PF: predicated region fallthrough
CT: control target
= control target key end

     0   :  { %s215_s0 = inlined_call_operand.vmem [shape: bf16[8,32], index: 0, kind: input, shape index: {}]   ;;  %s216_s1 = inlined_call_operand.vmem [shape: bf16[32,128], index: 1, kind: input, shape index: {}]   ;;  %s217_s2 = inlined_call_operand.vmem [shape: f32[1,128], index: 2, kind: input, shape index: {}]   ;;  %s218_s3 = inlined_call_operand.vmem [shape: f32[1,128], index: 3, kind: input, shape index: {}]   ;;  %s219_s4 = inlined_call_operand.vmem [shape: f32[1,128], index: 4, kind: input, shape index: {}]   ;;  %s220_s5 = inlined_call_operand.hbm [shape: f32[8,128], index: 5, kind: output, shape index: {}]  }
   0x1   :  { %v129_v0 = vld [vmem:[%s216_s1 + $0x8] sm:$0xff] }
   0x2   :  { %10 = vsyncpa [#allocation3], 0  ;;  %53 = vmatpush.bf16.msra.mxu0 %v129_v0  ;;  %v128_v1 = vld [vmem:[%s216_s1] sm:$0xff]  ;;  %vm43_vm0 = vcmask 261120   ;;  %s163_s27 = smov [#allocation2]   ;;  %s110_s6 = sshll.u32 %s220_s5, 4  ;;  %s111_s6 = int_to_ptr.hbm [resolvable:$true] %s110_s6 }
   0x3   :  { %v22_v2 = vld [vmem:[%s215_s0] sm:$0xf]  ;;  %s108_s28 = sshll.u32 %s163_s27, 4  ;;  %s109_s28 = int_to_ptr.vmem [resolvable:$true] %s108_s28 }
   0x4   :  { %v131_v3 = vld [vmem:[%s217_s2] ss:$0 sm:$0xff] }
   0x5   :  { %v79_v32 = vld [vmem:[%s218_s3] sm:$0x1] }
   0x6   :  { %54 = vmatpush.bf16.msra.mxu0 %v128_v1  ;;  %v132_v38 = vld [vmem:[%s219_s4] ss:$0 sm:$0xff] }
   0x9   :  { %127 = vmatmul.msk.bf16.vlgmr.msra.gmra.mxu0 %vm43_vm0, %v22_v2 }
  0x86   :  { %v56_v4 = vpop.f32.mrf.mxu0 }
  0x87   :  { %v57_v5 = vadd.f32 %v131_v3, %v56_v4 }
  0x89   :  { %133 = vtanh.f32 %v57_v5 }
  0x8e   :  { %v58_v6 = vpop.f32.mrf.mxu0 }
  0x8f   :  { %v134_v7 = vpop.eup %133 }
  0x90   :  { %v61_v8 = vrot.slane %v134_v7, 4  ;;  %v67_v9 = vmul.f32 %v134_v7, %v134_v7 }
  0x92   :  { %v62_v10 = vadd.f32 %v134_v7, %v61_v8  ;;  %v68_v11 = vrot.slane %v67_v9, 4 }
  0x94   :  { %v63_v12 = vrot.slane %v62_v10, 2  ;;  %v69_v13 = vadd.f32 %v68_v11, %v67_v9 }
  0x96   :  { %v64_v14 = vadd.f32 %v63_v12, %v62_v10  ;;  %v70_v15 = vrot.slane %v69_v13, 2 }
  0x98   :  { %v65_v16 = vrot.slane %v64_v14, 1  ;;  %v71_v17 = vadd.f32 %v70_v15, %v69_v13 }
  0x9a   :  { %v66_v18 = vadd.f32 %v65_v16, %v64_v14  ;;  %v72_v19 = vrot.slane %v71_v17, 1 }
  0x9c   :  { %v73_v20 = vadd.f32 %v72_v19, %v71_v17  ;;  %v74_v21 = vmul.f32 0.125, %v66_v18 }
  0x9e   :  { %v75_v22 = vmul.f32 0.125, %v73_v20  ;;  %v76_v23 = vmul.f32 %v74_v21, %v74_v21  ;;  %v92_v36 = vsub.f32 %v134_v7, %v74_v21 }
  0xa0   :  { %v77_v24 = vsub.f32 %v75_v22, %v76_v23 }
  0xa2   :  { %v78_v25 = vmax.f32 %v77_v24, 0.0 }
  0xa4   :  { %v80_v26 = vadd.f32 1e-05, %v78_v25 }
  0xa6   :  { %135 = vrsqrt.f32 %v80_v26  ;;  %vm87_vm2 = vweird.f32 %v80_v26 }
  0xac   :  { %v136_v27 = vpop.eup %135 }
  0xad   :  { %v82_v28 = vmul.f32 %v136_v27, %v80_v26  ;;  %vm88_vm1 = vweird.f32 %v136_v27 }
  0xae   :  { %vm89_vm3 = vmor %vm87_vm2, %vm88_vm1 }
  0xaf   :  { %v83_v29 = vmul.f32 %v136_v27, %v82_v28 }
  0xb1   :  { %v84_v30 = vmul.f32 0.5, %v83_v29 }
  0xb3   :  { %v85_v31 = vsub.f32 1.5, %v84_v30 }
  0xb5   :  { %v86_v33 = vmul.f32 %v136_v27, %v85_v31 }
  0xb7   :  { %v90_v34 = vsel %vm89_vm3, %v136_v27, %v86_v33 }
  0xb8   :  { %v91_v35 = vmul.f32 %v90_v34, %v79_v32 }
  0xba   :  { %v94_v37 = vperm.slane %v91_v35, 0 }
  0xbc   :  { %v96_v39 = vmul.f32 %v94_v37, %v92_v36 }
  0xbe   :  { %v101_v40 = vadd.f32 %v132_v38, %v96_v39 }
  0xc0   :  { %102 = vst [vmem:[#allocation2] sm:$0xff] %v101_v40 }
  0xc1   :  { %113 = dma.vmem_to_hbm [thread:$0]  %s109_s28, 128, %s111_s6, [#allocation3]  }
  0xc2   :  { %161 = dma.done.wait [#allocation3], 128  }
  0xc3   :  { %162 = vsyncadd [#allocation3], 4294967168 }
  0xc4   :  { %118 = vsyncpa [#allocation3], 1 }

</bundles_post_ra>
